<compile_context>
chip_gen: v6e
topology: v6e:2x2x1
jax: 0.10.0
libtpu: 0.0.40
codegen_flags: <defaults>
</compile_context>

<pallas_src>
import functools

import jax
import jax.numpy as jnp
from jax.experimental import pallas as pl
from jax.experimental.pallas import tpu as pltpu

IN_FEATURES = 28 * 28   # 784
HIDDEN = 256            # int(args.width_mult * 400), assumed lane-aligned
OUT_FEATURES = 10       # args.output_size (assumed)
OUT_PAD = 128           # lane-dense padded output width


def _round_up(x, m):
    return (x + m - 1) // m * m


def fc400_kernel(x_ref, w1_ref, w2_ref, w3_ref, o_ref):
    # x_ref: (TILE_N, 784) f32; weights bf16; o_ref: (TILE_N, 128) bf16.
    x = x_ref[...].astype(jnp.bfloat16)               # in-kernel cast; x stays f32 in HBM
    h = jnp.dot(x, w1_ref[...], preferred_element_type=jnp.float32)    # (TILE_N, H)
    h = jnp.maximum(h.astype(jnp.bfloat16), 0)        # ReLU fused with downcast; Dropout=id
    h = jnp.dot(h, w2_ref[...], preferred_element_type=jnp.float32)    # (TILE_N, H)
    h = jnp.maximum(h.astype(jnp.bfloat16), 0)
    o_ref[...] = jnp.dot(h, w3_ref[...],
                         preferred_element_type=jnp.float32).astype(o_ref.dtype)


@functools.partial(jax.jit, static_argnames=("max_tile_n",))
def fc400_forward(x, params, *, max_tile_n=2048):
    n = x.shape[0]
    x2d = x.reshape(n, IN_FEATURES)                   # == x.view(N, 784, 1, 1); stays f32

    # Batch tiling:
    #  * n <= 256: single grid step, rows rounded only to the 8-sublane granule
    #    (tiny batches are launch-bound; don't DMA 128 padded rows).
    #  * otherwise: >= 2 steps of a multiple-of-128 tile (keeps both v7x TCs busy
    #    and amortizes per-step overhead), capped at max_tile_n for VMEM.
    if n <= 256:
        tile_n = _round_up(max(n, 8), 8)
    else:
        tile_n = min(max_tile_n, _round_up((n + 1) // 2, 128))
    n_pad = _round_up(n, tile_n)
    if n_pad != n:
        x2d = jnp.pad(x2d, ((0, n_pad - n), (0, 0)))

    w1, w2, w3 = params["w1"], params["w2"], params["w3"]   # bf16, w3 padded to 128 cols

    flops = 2 * n_pad * (IN_FEATURES * HIDDEN + HIDDEN * HIDDEN + HIDDEN * OUT_PAD)
    bytes_accessed = (n_pad * IN_FEATURES * 4                  # x read as f32
                      + (w1.size + w2.size + w3.size) * 2      # bf16 weights
                      + n_pad * OUT_PAD * 2)                   # bf16 output

    resident = lambda i: (0, 0)
    out = pl.pallas_call(
        fc400_kernel,
        out_shape=jax.ShapeDtypeStruct((n_pad, OUT_PAD), jnp.bfloat16),
        grid_spec=pltpu.PrefetchScalarGridSpec(
            num_scalar_prefetch=0,
            grid=(n_pad // tile_n,),
            in_specs=[
                pl.BlockSpec((tile_n, IN_FEATURES), lambda i: (i, 0)),    # x tile (f32)
                pl.BlockSpec((IN_FEATURES, HIDDEN), resident,
                             pipeline_mode=pl.Buffered(1)),               # w1 resident
                pl.BlockSpec((HIDDEN, HIDDEN), resident,
                             pipeline_mode=pl.Buffered(1)),               # w2 resident
                pl.BlockSpec((HIDDEN, OUT_PAD), resident,
                             pipeline_mode=pl.Buffered(1)),               # w3 resident
            ],
            out_specs=pl.BlockSpec((tile_n, OUT_PAD), lambda i: (i, 0)),
        ),
        compiler_params=pltpu.CompilerParams(
            dimension_semantics=("parallel",),
            vmem_limit_bytes=48 * 1024 * 1024,   # tile_n=2048 fits; headroom under v7x 64 MiB
        ),
        cost_estimate=pl.CostEstimate(
            flops=flops, transcendentals=0, bytes_accessed=bytes_accessed),
    )(x2d, w1, w2, w3)

    # Slice to the real batch / logits, cast the tiny (n, 10) slab back to f32,
    # and match PyTorch's out.squeeze() rank behaviour for n == 1.
    # TODO(synk): a downstream consumer (loss/argmax) could take the padded bf16
    # (n_pad, 128) output directly and fuse this slice away.
    logits = out[:n, :OUT_FEATURES].astype(jnp.float32)
    return logits[0] if n == 1 else logits


def init_params(key):
    k1, k2, k3 = jax.random.split(key, 3)

    def conv1x1(k, cin, cout):
        # Conv2d(cin, cout, 1) default init ~ U(-1/sqrt(cin), 1/sqrt(cin));
        # weight (cout, cin, 1, 1) stored transposed as (cin, cout).
        bound = 1.0 / jnp.sqrt(jnp.float32(cin))
        return jax.random.uniform(k, (cin, cout), jnp.float32, -bound, bound)

    w3 = conv1x1(k3, HIDDEN, OUT_FEATURES)
    w3_pad = jnp.zeros((HIDDEN, OUT_PAD), jnp.float32).at[:, :OUT_FEATURES].set(w3)
    return {
        "w1": conv1x1(k1, IN_FEATURES, HIDDEN).astype(jnp.bfloat16),
        "w2": conv1x1(k2, HIDDEN, HIDDEN).astype(jnp.bfloat16),
        "w3": w3_pad.astype(jnp.bfloat16),      # padded columns are exact zeros
    }


def _reference(x, params):
    # Pure-JAX reference using the same bf16-operand / f32-accum math.
    n = x.shape[0]
    h = x.reshape(n, IN_FEATURES).astype(jnp.bfloat16)
    h = jnp.dot(h, params["w1"], preferred_element_type=jnp.float32)
    h = jnp.maximum(h, 0.0).astype(jnp.bfloat16)
    h = jnp.dot(h, params["w2"], preferred_element_type=jnp.float32)
    h = jnp.maximum(h, 0.0).astype(jnp.bfloat16)
    h = jnp.dot(h, params["w3"], preferred_element_type=jnp.float32)
    return h[:, :OUT_FEATURES]


if __name__ == "__main__":
    key = jax.random.PRNGKey(0)
    kx, kp = jax.random.split(key)
    params = init_params(kp)

    # Small batch: single-step path (tile_n = 8, grid = (1,), no padding).
    x_small = jax.random.normal(kx, (8, 1, 28, 28), jnp.float32)   # MNIST-like input
    out_small = fc400_forward(x_small, params)
    jax.block_until_ready(out_small)
    assert out_small.shape == (8, OUT_FEATURES) and out_small.dtype == jnp.float32
    assert jnp.allclose(out_small, _reference(x_small, params), rtol=1e-2, atol=1e-2)

    # Larger batch: tiled path (tile_n = 256, grid = (2,), padded tail rows).
    x_big = jax.random.normal(kx, (384, 1, 28, 28), jnp.float32)
    out_big = fc400_forward(x_big, params)
    jax.block_until_ready(out_big)
    assert out_big.shape == (384, OUT_FEATURES)
    assert jnp.allclose(out_big, _reference(x_big, params), rtol=1e-2, atol=1e-2)

    print("KERNEL_OK")
</pallas_src>

<mosaic_0001>
module attributes {stable_mosaic.version = 11 : i64} {
  func.func @fc400_kernel(%arg0: i32, %arg1: memref<8x784xf32, #tpu.memory_space<vmem>>, %arg2: memref<784x256xbf16, #tpu.memory_space<vmem>>, %arg3: memref<256x256xbf16, #tpu.memory_space<vmem>>, %arg4: memref<256x128xbf16, #tpu.memory_space<vmem>>, %arg5: memref<8x128xbf16, #tpu.memory_space<vmem>>) attributes {dimension_semantics = [#tpu.dimension_semantics<parallel>], iteration_bounds = array<i64: 1>, scalar_prefetch = 0 : i64, scratch_operands = 0 : i64, tpu.core_type = #tpu.core_type<tc>, window_params = [{transform_indices = @transform_0, window_bounds = array<i64: 8, 784>}, {pipeline_mode = #tpu.pipeline_mode<synchronous>, transform_indices = @transform_1, window_bounds = array<i64: 784, 256>}, {pipeline_mode = #tpu.pipeline_mode<synchronous>, transform_indices = @transform_2, window_bounds = array<i64: 256, 256>}, {pipeline_mode = #tpu.pipeline_mode<synchronous>, transform_indices = @transform_3, window_bounds = array<i64: 256, 128>}, {transform_indices = @transform_4, window_bounds = array<i64: 8, 128>}]} {
    %c0 = arith.constant 0 : index
    %c0_0 = arith.constant 0 : index
    %0 = vector.load %arg1[%c0, %c0_0] : memref<8x784xf32, #tpu.memory_space<vmem>>, vector<8x784xf32>
    %1 = arith.truncf %0 : vector<8x784xf32> to vector<8x784xbf16>
    %c0_1 = arith.constant 0 : index
    %c0_2 = arith.constant 0 : index
    %2 = vector.load %arg2[%c0_1, %c0_2] : memref<784x256xbf16, #tpu.memory_space<vmem>>, vector<784x256xbf16>
    %cst = arith.constant dense<0.000000e+00> : vector<8x256xf32>
    %3 = tpu.matmul %1, %2, %cst {dimension_numbers = #tpu.dot_dimension_numbers<[1], [0], [0], [1], [0, 0, 1, 1], [], []>} : vector<8x784xbf16>, vector<784x256xbf16>, vector<8x256xf32> -> vector<8x256xf32>
    %4 = arith.truncf %3 : vector<8x256xf32> to vector<8x256xbf16>
    %cst_3 = arith.constant 0.000000e+00 : bf16
    %5 = vector.broadcast %cst_3 : bf16 to vector<8x256xbf16>
    %6 = arith.maximumf %4, %5 : vector<8x256xbf16>
    %c0_4 = arith.constant 0 : index
    %c0_5 = arith.constant 0 : index
    %7 = vector.load %arg3[%c0_4, %c0_5] : memref<256x256xbf16, #tpu.memory_space<vmem>>, vector<256x256xbf16>
    %cst_6 = arith.constant dense<0.000000e+00> : vector<8x256xf32>
    %8 = tpu.matmul %6, %7, %cst_6 {dimension_numbers = #tpu.dot_dimension_numbers<[1], [0], [0], [1], [0, 0, 1, 1], [], []>} : vector<8x256xbf16>, vector<256x256xbf16>, vector<8x256xf32> -> vector<8x256xf32>
    %9 = arith.truncf %8 : vector<8x256xf32> to vector<8x256xbf16>
    %cst_7 = arith.constant 0.000000e+00 : bf16
    %10 = vector.broadcast %cst_7 : bf16 to vector<8x256xbf16>
    %11 = arith.maximumf %9, %10 : vector<8x256xbf16>
    %c0_8 = arith.constant 0 : index
    %c0_9 = arith.constant 0 : index
    %12 = vector.load %arg4[%c0_8, %c0_9] : memref<256x128xbf16, #tpu.memory_space<vmem>>, vector<256x128xbf16>
    %cst_10 = arith.constant dense<0.000000e+00> : vector<8x128xf32>
    %13 = tpu.matmul %11, %12, %cst_10 {dimension_numbers = #tpu.dot_dimension_numbers<[1], [0], [0], [1], [0, 0, 1, 1], [], []>} : vector<8x256xbf16>, vector<256x128xbf16>, vector<8x128xf32> -> vector<8x128xf32>
    %14 = arith.truncf %13 : vector<8x128xf32> to vector<8x128xbf16>
    %c0_11 = arith.constant 0 : index
    %c0_12 = arith.constant 0 : index
    %15 = vector.load %arg5[%c0_11, %c0_12] : memref<8x128xbf16, #tpu.memory_space<vmem>>, vector<8x128xbf16>
    tpu.vector_store %arg5[%c0_11, %c0_12], %14 {strides = array<i32>} : memref<8x128xbf16, #tpu.memory_space<vmem>>, vector<8x128xbf16>,
    return
  }
  func.func @transform_0(%arg0: i32) -> (i32, i32) {
    %c0_i32 = arith.constant 0 : i32
    %c0_i32_0 = arith.constant 0 : i32
    return %arg0, %c0_i32 : i32, i32
  }
  func.func @transform_1(%arg0: i32) -> (i32, i32) {
    %c0_i32 = arith.constant 0 : i32
    %c0_i32_0 = arith.constant 0 : i32
    %c0_i32_1 = arith.constant 0 : i32
    return %c0_i32, %c0_i32_0 : i32, i32
  }
  func.func @transform_2(%arg0: i32) -> (i32, i32) {
    %c0_i32 = arith.constant 0 : i32
    %c0_i32_0 = arith.constant 0 : i32
    %c0_i32_1 = arith.constant 0 : i32
    return %c0_i32, %c0_i32_0 : i32, i32
  }
  func.func @transform_3(%arg0: i32) -> (i32, i32) {
    %c0_i32 = arith.constant 0 : i32
    %c0_i32_0 = arith.constant 0 : i32
    %c0_i32_1 = arith.constant 0 : i32
    return %c0_i32, %c0_i32_0 : i32, i32
  }
  func.func @transform_4(%arg0: i32) -> (i32, i32) {
    %c0_i32 = arith.constant 0 : i32
    %c0_i32_0 = arith.constant 0 : i32
    return %arg0, %c0_i32 : i32, i32
  }
}

</mosaic_0001>

<bundles_post_ra>
// kernel: fc400_forward.1
= control target key start
LH: loop header
LB: loop body
LE: loop exit
PB: predicated region body
PF: predicated region fallthrough
CT: control target
= control target key end

     0   :  { %9 = vsyncpa [#allocation3], 0  ;;  %s2025_s0 = inlined_call_operand.vmem [shape: f32[8,784], index: 0, kind: input, shape index: {}]   ;;  %s2026_s1 = inlined_call_operand.vmem [shape: bf16[784,256], index: 1, kind: input, shape index: {}]   ;;  %s2027_s2 = inlined_call_operand.hbm [shape: bf16[256,256], index: 2, kind: input, shape index: {}]   ;;  %s2028_s3 = inlined_call_operand.hbm [shape: bf16[256,128], index: 3, kind: input, shape index: {}]   ;;  %s2029_s4 = inlined_call_operand.vmem [shape: bf16[8,128], index: 4, kind: output, shape index: {}]  }
   0x1   :  { %10 = vsyncpa [#allocation5], 0  ;;  %s1664_s15 = smov [#allocation2]  }
   0x2   :  { %s20_s16 = sshll.u32 %s1664_s15, 4  ;;  %s21_s16 = int_to_ptr.vmem [resolvable:$true] %s20_s16 }
   0x3   :  { %s1628_s17 = scalar_lea.vmem %s21_s16, 4096  ;;  %p1633_p1 = scmp.lt.s32.totalorder %s21_s16, %s21_s16 }
   0x4   :  { %p1629_p0 = scmp.ne.s32.totalorder %s21_s16, %s1628_s17  ;;  %p1634_p2 = scmp.lt.s32.totalorder %s1628_s17, %s1628_s17 }
   0x6   :  { %p1635_p3 = por %p1634_p2, %p1633_p1 }
   0x8   :  { %p1636_p4 = pnand %p1635_p3, %p1629_p0 }
   0xa   :  { %1639 = shalt.err (!%p1636_p4)
}
   0xb   :  { %s1665_s18 = smov 128   ;;  %s1666_s19 = smov 8  }
   0xc   :  { %26 = dma.hbm_to_vmem [thread:$0]  %s2027_s2, 4096, %s21_s16, [#allocation3], %s1665_s18, %s1665_s18, %s1666_s19  }
   0xd   :  { %s1667_s22 = smov [#allocation4]  }
   0xe   :  { %s32_s23 = sshll.u32 %s1667_s22, 4  ;;  %s33_s23 = int_to_ptr.vmem [resolvable:$true] %s32_s23 }
   0xf   :  { %s1648_s24 = scalar_lea.vmem %s33_s23, 2048  ;;  %p1653_p6 = scmp.lt.s32.totalorder %s33_s23, %s33_s23 }
  0x10   :  { %p1649_p5 = scmp.ne.s32.totalorder %s33_s23, %s1648_s24  ;;  %p1654_p7 = scmp.lt.s32.totalorder %s1648_s24, %s1648_s24 }
  0x12   :  { %p1655_p8 = por %p1654_p7, %p1653_p6 }
  0x14   :  { %p1656_p9 = pnand %p1655_p8, %p1649_p5 }
  0x16   :  { %1659 = shalt.err (!%p1656_p9)
}
  0x17   :  { %s1668_s25 = smov 64   ;;  %s1669_s26 = smov 4  }
  0x18   :  { %38 = dma.hbm_to_vmem [thread:$0]  %s2028_s3, 2048, %s33_s23, [#allocation5], %s1668_s25, %s1668_s25, %s1669_s26  }
  0x19   :  { %1660 = dma.done.wait [#allocation3], 4096  }
  0x1a   :  { %1661 = vsyncadd [#allocation3], 4294963200 }
  0x1b   :  { %1662 = dma.done.wait [#allocation5], 2048  }
  0x1c   :  { %1663 = vsyncadd [#allocation5], 4294965248  ;;  %v1409_v0 = vld [vmem:[%s2026_s1 + $0x74] ss:$8 sps:$4 sm:$0xff]   ;;  %v1413_v2 = vld [vmem:[%s2026_s1 + $0x70] ss:$8 sps:$4 sm:$0xff]  }
  0x1d   :  { %v1411_v1 = vld [vmem:[%s2026_s1 + $0x174] ss:$8 sps:$4 sm:$0xff]   ;;  %652 = vmatprep.subr.bf16.mxu0 %v1409_v0  ;;  %v1414_v3 = vld [vmem:[%s2026_s1 + $0x170] ss:$8 sps:$4 sm:$0xff]   ;;  %v1415_v4 = vld [vmem:[%s2026_s1 + $0x64] ss:$8 sps:$4 sm:$0xff]  }
  0x1e   :  { %693 = vmatprep.subr.bf16.mxu1 %v1411_v1  ;;  %653 = vmatpush1.bf16.msra.mxu0 %v1413_v2  ;;  %v1417_v5 = vld [vmem:[%s2026_s1 + $0x164] ss:$8 sps:$4 sm:$0xff]   ;;  %v1419_v6 = vld [vmem:[%s2026_s1 + $0x60] ss:$8 sps:$4 sm:$0xff]   ;;  %v1421_v8 = vld [vmem:[%s2026_s1 + $0x54] ss:$8 sps:$4 sm:$0xff]  }
  0x1f   :  { %694 = vmatpush1.bf16.msra.mxu1 %v1414_v3  ;;  %654 = vmatprep.subr.bf16.mxu0 %v1415_v4  ;;  %v1420_v7 = vld [vmem:[%s2026_s1 + $0x160] ss:$8 sps:$4 sm:$0xff]   ;;  %v1423_v9 = vld [vmem:[%s2026_s1 + $0x154] ss:$8 sps:$4 sm:$0xff]   ;;  %v1425_v10 = vld [vmem:[%s2026_s1 + $0x50] ss:$8 sps:$4 sm:$0xff]  }
  0x20   :  { %695 = vmatprep.subr.bf16.mxu1 %v1417_v5  ;;  %v1426_v11 = vld [vmem:[%s2026_s1 + $0x150] ss:$8 sps:$4 sm:$0xff]   ;;  %v1427_v12 = vld [vmem:[%s2026_s1 + $0x44] ss:$8 sps:$4 sm:$0xff]   ;;  %v1431_v14 = vld [vmem:[%s2026_s1 + $0x40] ss:$8 sps:$4 sm:$0xff]  }
  0x21   :  { %v1429_v13 = vld [vmem:[%s2026_s1 + $0x144] ss:$8 sps:$4 sm:$0xff]   ;;  %v1432_v15 = vld [vmem:[%s2026_s1 + $0x140] ss:$8 sps:$4 sm:$0xff]   ;;  %v1433_v16 = vld [vmem:[%s2026_s1 + $0x34] ss:$8 sps:$4 sm:$0xff]  }
  0x22   :  { %655 = vmatpush1.bf16.msra.mxu0 %v1419_v6  ;;  %v1435_v17 = vld [vmem:[%s2026_s1 + $0x134] ss:$8 sps:$4 sm:$0xff]   ;;  %v1437_v18 = vld [vmem:[%s2026_s1 + $0x30] ss:$8 sps:$4 sm:$0xff]   ;;  %v1439_v20 = vld [vmem:[%s2026_s1 + $0x24] ss:$8 sps:$4 sm:$0xff]  }
  0x23   :  { %696 = vmatpush1.bf16.msra.mxu1 %v1420_v7  ;;  %656 = vmatprep.subr.bf16.mxu0 %v1421_v8  ;;  %v1438_v19 = vld [vmem:[%s2026_s1 + $0x130] ss:$8 sps:$4 sm:$0xff]   ;;  %v1441_v21 = vld [vmem:[%s2026_s1 + $0x124] ss:$8 sps:$4 sm:$0xff]   ;;  %v1443_v22 = vld [vmem:[%s2026_s1 + $0x20] ss:$8 sps:$4 sm:$0xff]  }
  0x24   :  { %697 = vmatprep.subr.bf16.mxu1 %v1423_v9  ;;  %v1444_v23 = vld [vmem:[%s2026_s1 + $0x120] ss:$8 sps:$4 sm:$0xff]   ;;  %v1445_v24 = vld [vmem:[%s2026_s1 + $0x14] ss:$8 sps:$4 sm:$0xff]   ;;  %v1449_v26 = vld [vmem:[%s2026_s1 + $0x10] ss:$8 sps:$4 sm:$0xff]  }
  0x25   :  { %v1447_v25 = vld [vmem:[%s2026_s1 + $0x114] ss:$8 sps:$4 sm:$0xff]   ;;  %v1450_v27 = vld [vmem:[%s2026_s1 + $0x110] ss:$8 sps:$4 sm:$0xff]   ;;  %v1451_v28 = vld [vmem:[%s2026_s1 + $0x4] ss:$8 sps:$4 sm:$0xff]  }
  0x26   :  { %657 = vmatpush1.bf16.msra.mxu0 %v1425_v10  ;;  %v1453_v29 = vld [vmem:[%s2026_s1 + $0x104] ss:$8 sps:$4 sm:$0xff]   ;;  %v1455_v30 = vld [vmem:[%s2026_s1] ss:$8 sps:$4 sm:$0xff]   ;;  %v1457_v32 = vld [vmem:[%s2026_s1 + $0xf4] ss:$8 sps:$4 sm:$0xff]  }
  0x27   :  { %698 = vmatpush1.bf16.msra.mxu1 %v1426_v11  ;;  %658 = vmatprep.subr.bf16.mxu0 %v1427_v12  ;;  %v1456_v31 = vld [vmem:[%s2026_s1 + $0x100] ss:$8 sps:$4 sm:$0xff]   ;;  %v1459_v33 = vld [vmem:[%s2026_s1 + $0x1f4] ss:$8 sps:$4 sm:$0xff]   ;;  %v1461_v34 = vld [vmem:[%s2026_s1 + $0xf0] ss:$8 sps:$4 sm:$0xff]  }
  0x28   :  { %699 = vmatprep.subr.bf16.mxu1 %v1429_v13  ;;  %v1462_v35 = vld [vmem:[%s2026_s1 + $0x1f0] ss:$8 sps:$4 sm:$0xff]   ;;  %v1463_v36 = vld [vmem:[%s2026_s1 + $0xe4] ss:$8 sps:$4 sm:$0xff]   ;;  %v1467_v38 = vld [vmem:[%s2026_s1 + $0xe0] ss:$8 sps:$4 sm:$0xff]  }
  0x29   :  { %v1465_v37 = vld [vmem:[%s2026_s1 + $0x1e4] ss:$8 sps:$4 sm:$0xff]   ;;  %v1468_v39 = vld [vmem:[%s2026_s1 + $0x1e0] ss:$8 sps:$4 sm:$0xff]   ;;  %v1469_v40 = vld [vmem:[%s2026_s1 + $0xd4] ss:$8 sps:$4 sm:$0xff]  }
  0x2a   :  { %659 = vmatpush1.bf16.msra.mxu0 %v1431_v14  ;;  %v1471_v41 = vld [vmem:[%s2026_s1 + $0x1d4] ss:$8 sps:$4 sm:$0xff]   ;;  %v1473_v42 = vld [vmem:[%s2026_s1 + $0xd0] ss:$8 sps:$4 sm:$0xff]   ;;  %v1475_v44 = vld [vmem:[%s2026_s1 + $0xc4] ss:$8 sps:$4 sm:$0xff]  }
  0x2b   :  { %700 = vmatpush1.bf16.msra.mxu1 %v1432_v15  ;;  %660 = vmatprep.subr.bf16.mxu0 %v1433_v16  ;;  %v1474_v43 = vld [vmem:[%s2026_s1 + $0x1d0] ss:$8 sps:$4 sm:$0xff]   ;;  %v1477_v45 = vld [vmem:[%s2026_s1 + $0x1c4] ss:$8 sps:$4 sm:$0xff]   ;;  %v1479_v47 = vld [vmem:[%s2026_s1 + $0xc0] ss:$8 sps:$4 sm:$0xff]  }
  0x2c   :  { %701 = vmatprep.subr.bf16.mxu1 %v1435_v17  ;;  %v47_v46 = vld [vmem:[%s2025_s0 + $0x8] sm:$0xff]  ;;  %v49_v50 = vld [vmem:[%s2025_s0 + $0x18] sm:$0xff]  ;;  %v46_v4 = vld [vmem:[%s2025_s0] sm:$0xff]  ;;  %vm648_vm0 = vcmask 130048  }
  0x2d   :  { %v1480_v48 = vld [vmem:[%s2026_s1 + $0x1c0] ss:$8 sps:$4 sm:$0xff]   ;;  %v54_v49 = vpack.c.bf16 %v47_v46, %v47_v46  ;;  %v1481_v51 = vld [vmem:[%s2026_s1 + $0xb4] ss:$8 sps:$4 sm:$0xff]   ;;  %v56_v52 = vpack.c.bf16 %v49_v50, %v49_v50  ;;  %v1485_v54 = vld [vmem:[%s2026_s1 + $0xb0] ss:$8 sps:$4 sm:$0xff]   ;;  %v53_v7 = vpack.c.bf16 %v46_v4, %v46_v4 }
  0x2e   :  { %661 = vmatpush1.bf16.msra.mxu0 %v1437_v18  ;;  %v1483_v53 = vld [vmem:[%s2026_s1 + $0x1b4] ss:$8 sps:$4 sm:$0xff]   ;;  %v1486_v55 = vld [vmem:[%s2026_s1 + $0x1b0] ss:$8 sps:$4 sm:$0xff]   ;;  %v1487_v56 = vld [vmem:[%s2026_s1 + $0xa4] ss:$8 sps:$4 sm:$0xff]  }
  0x2f   :  { %702 = vmatpush1.bf16.msra.mxu1 %v1438_v19  ;;  %662 = vmatprep.subr.bf16.mxu0 %v1439_v20  ;;  %v1489_v57 = vld [vmem:[%s2026_s1 + $0x1a4] ss:$8 sps:$4 sm:$0xff]   ;;  %v1491_v58 = vld [vmem:[%s2026_s1 + $0xa0] ss:$8 sps:$4 sm:$0xff]   ;;  %v1493_v60 = vld [vmem:[%s2026_s1 + $0x94] ss:$8 sps:$4 sm:$0xff]  }
  0x30   :  { %703 = vmatprep.subr.bf16.mxu1 %v1441_v21  ;;  %684 = vmatprep.mubr.bf16.mxu0 %v54_v49  ;;  %v1492_v59 = vld [vmem:[%s2026_s1 + $0x1a0] ss:$8 sps:$4 sm:$0xff]   ;;  %v1495_v61 = vld [vmem:[%s2026_s1 + $0x194] ss:$8 sps:$4 sm:$0xff]   ;;  %v1497_v62 = vld [vmem:[%s2026_s1 + $0x90] ss:$8 sps:$4 sm:$0xff]  }
  0x31   :  { %725 = vmatprep.mubr.bf16.mxu1 %v56_v52  ;;  %v1498_v63 = vld [vmem:[%s2026_s1 + $0x190] ss:$8 sps:$4 sm:$0xff]   ;;  %v1499_v0 = vld [vmem:[%s2026_s1 + $0x84] ss:$8 sps:$4 sm:$0xff]   ;;  %v1503_v2 = vld [vmem:[%s2026_s1 + $0x80] ss:$8 sps:$4 sm:$0xff]  }
  0x32   :  { %663 = vmatpush1.bf16.msra.mxu0 %v1443_v22  ;;  %v1501_v1 = vld [vmem:[%s2026_s1 + $0x184] ss:$8 sps:$4 sm:$0xff]   ;;  %v1504_v3 = vld [vmem:[%s2026_s1 + $0x180] ss:$8 sps:$4 sm:$0xff]   ;;  %v48_v5 = vld [vmem:[%s2025_s0 + $0x10] sm:$0xff]  ;;  %v1670_v19 = vmov 0  }
  0x33   :  { %704 = vmatpush1.bf16.msra.mxu1 %v1444_v23  ;;  %664 = vmatprep.subr.bf16.mxu0 %v1445_v24  ;;  %v1507_v6 = vld [vmem:[%s2026_s1 + $0x274] ss:$8 sps:$4 sm:$0xff]   ;;  %v55_v8 = vpack.c.bf16 %v48_v5, %v48_v5  ;;  %v1505_v9 = vld [vmem:[%s2026_s1 + $0x270] ss:$8 sps:$4 sm:$0xff]   ;;  %v1510_v10 = vld [vmem:[%s2026_s1 + $0x264] ss:$8 sps:$4 sm:$0xff]  }
  0x34   :  { %705 = vmatprep.subr.bf16.mxu1 %v1447_v25  ;;  %v1550_v11 = vld [vmem:[%s2026_s1 + $0x300] ss:$8 sps:$4 sm:$0xff]   ;;  %v1552_v12 = vld [vmem:[%s2026_s1 + $0x304] ss:$8 sps:$4 sm:$0xff]   ;;  %v1513_v14 = vld [vmem:[%s2026_s1 + $0x254] ss:$8 sps:$4 sm:$0xff]  }
  0x35   :  { %v1508_v13 = vld [vmem:[%s2026_s1 + $0x260] ss:$8 sps:$4 sm:$0xff]   ;;  %v52_v15 = vld [vmem:[%s2025_s0 + $0x30] sm:$0xff]  ;;  %v1516_v20 = vld [vmem:[%s2026_s1 + $0x244] ss:$8 sps:$4 sm:$0xff]  }
  0x36   :  { %665 = vmatpush1.bf16.msra.mxu0 %v1449_v26  ;;  %v51_v16 = vld [vmem:[%s2025_s0 + $0x28] sm:$0xff]  ;;  %v1511_v18 = vld [vmem:[%s2026_s1 + $0x250] ss:$8 sps:$4 sm:$0xff]   ;;  %v59_v21 = vpack.c.bf16 %v52_v15, %v52_v15  ;;  %v1519_v23 = vld [vmem:[%s2026_s1 + $0x234] ss:$8 sps:$4 sm:$0xff]  }
  0x37   :  { %706 = vmatpush1.bf16.msra.mxu1 %v1450_v27  ;;  %666 = vmatprep.subr.bf16.mxu0 %v1451_v28  ;;  %v58_v17 = vpack.c.bf16 %v51_v16, %v51_v16  ;;  %v1514_v22 = vld [vmem:[%s2026_s1 + $0x240] ss:$8 sps:$4 sm:$0xff]   ;;  %v1517_v24 = vld [vmem:[%s2026_s1 + $0x230] ss:$8 sps:$4 sm:$0xff]   ;;  %v1522_v25 = vld [vmem:[%s2026_s1 + $0x224] ss:$8 sps:$4 sm:$0xff]  }
  0x38   :  { %707 = vmatprep.subr.bf16.mxu1 %v1453_v29  ;;  %v1520_v26 = vld [vmem:[%s2026_s1 + $0x220] ss:$8 sps:$4 sm:$0xff]   ;;  %v1525_v27 = vld [vmem:[%s2026_s1 + $0x214] ss:$8 sps:$4 sm:$0xff]   ;;  %v1523_v28 = vld [vmem:[%s2026_s1 + $0x210] ss:$8 sps:$4 sm:$0xff]  }
  0x39   :  { %v1528_v29 = vld [vmem:[%s2026_s1 + $0x204] ss:$8 sps:$4 sm:$0xff]   ;;  %v1553_v46 = vld [vmem:[%s2026_s1 + $0x280] ss:$8 sps:$4 sm:$0xff]   ;;  %v1556_v49 = vld [vmem:[#allocation2 + $0x70] ss:$8 sps:$4 sm:$0xff]  }
  0x3a   :  { %667 = vmatpush1.bf16.msra.mxu0 %v1455_v30  ;;  %v1526_v30 = vld [vmem:[%s2026_s1 + $0x200] ss:$8 sps:$4 sm:$0xff]   ;;  %v1558_v50 = vld [vmem:[#allocation2 + $0x74] ss:$8 sps:$4 sm:$0xff]   ;;  %v1603_v15 = vld [vmem:[#allocation2 + $0x84] ss:$8 sps:$4 sm:$0xff]  }
  0x3b   :  { %708 = vmatpush1.bf16.msra.mxu1 %v1456_v31  ;;  %668 = vmatprep.subr.bf16.mxu0 %v1457_v32  ;;  %v1531_v31 = vld [vmem:[%s2026_s1 + $0x2f4] ss:$8 sps:$4 sm:$0xff]   ;;  %v1529_v32 = vld [vmem:[%s2026_s1 + $0x2f0] ss:$8 sps:$4 sm:$0xff]   ;;  %v1559_v52 = vld [vmem:[#allocation2 + $0x60] ss:$8 sps:$4 sm:$0xff]  }
  0x3c   :  { %709 = vmatprep.subr.bf16.mxu1 %v1459_v33  ;;  %v1534_v33 = vld [vmem:[%s2026_s1 + $0x2e4] ss:$8 sps:$4 sm:$0xff]   ;;  %v1583_v4 = vld [vmem:[#allocation2 + $0xe0] ss:$8 sps:$4 sm:$0xff]   ;;  %v1588_v5 = vld [vmem:[#allocation2 + $0xd4] ss:$8 sps:$4 sm:$0xff]  }
  0x3d   :  { %v1601_v16 = vld [vmem:[#allocation2 + $0x80] ss:$8 sps:$4 sm:$0xff]  }
  0x3e   :  { %669 = vmatpush2.bf16.msra.mxu0 %v1461_v34  ;;  %v1532_v34 = vld [vmem:[%s2026_s1 + $0x2e0] ss:$8 sps:$4 sm:$0xff]  }
  0x3f   :  { %710 = vmatpush2.bf16.msra.mxu1 %v1462_v35  ;;  %670 = vmatprep.subr.bf16.mxu0 %v1463_v36  ;;  %v1537_v35 = vld [vmem:[%s2026_s1 + $0x2d4] ss:$8 sps:$4 sm:$0xff]   ;;  %v1535_v36 = vld [vmem:[%s2026_s1 + $0x2d0] ss:$8 sps:$4 sm:$0xff]  }
  0x40   :  { %711 = vmatprep.subr.bf16.mxu1 %v1465_v37  ;;  %v1540_v37 = vld [vmem:[%s2026_s1 + $0x2c4] ss:$8 sps:$4 sm:$0xff]  }
  0x42   :  { %671 = vmatpush2.bf16.msra.mxu0 %v1467_v38  ;;  %v1538_v38 = vld [vmem:[%s2026_s1 + $0x2c0] ss:$8 sps:$4 sm:$0xff]  }
  0x43   :  { %712 = vmatpush2.bf16.msra.mxu1 %v1468_v39  ;;  %672 = vmatprep.subr.bf16.mxu0 %v1469_v40  ;;  %v1543_v39 = vld [vmem:[%s2026_s1 + $0x2b4] ss:$8 sps:$4 sm:$0xff]   ;;  %v1541_v40 = vld [vmem:[%s2026_s1 + $0x2b0] ss:$8 sps:$4 sm:$0xff]  }
  0x44   :  { %713 = vmatprep.subr.bf16.mxu1 %v1471_v41  ;;  %v1546_v41 = vld [vmem:[%s2026_s1 + $0x2a4] ss:$8 sps:$4 sm:$0xff]  }
  0x46   :  { %673 = vmatpush2.bf16.msra.mxu0 %v1473_v42  ;;  %v1544_v42 = vld [vmem:[%s2026_s1 + $0x2a0] ss:$8 sps:$4 sm:$0xff]  }
  0x47   :  { %714 = vmatpush2.bf16.msra.mxu1 %v1474_v43  ;;  %674 = vmatprep.subr.bf16.mxu0 %v1475_v44  ;;  %v1549_v43 = vld [vmem:[%s2026_s1 + $0x294] ss:$8 sps:$4 sm:$0xff]   ;;  %v1547_v44 = vld [vmem:[%s2026_s1 + $0x290] ss:$8 sps:$4 sm:$0xff]  }
  0x48   :  { %715 = vmatprep.subr.bf16.mxu1 %v1477_v45  ;;  %v1555_v45 = vld [vmem:[%s2026_s1 + $0x284] ss:$8 sps:$4 sm:$0xff]  }
  0x4a   :  { %675 = vmatpush2.bf16.msra.mxu0 %v1479_v47  ;;  %v50_v47 = vld [vmem:[%s2025_s0 + $0x20] sm:$0xff] }
  0x4b   :  { %716 = vmatpush2.bf16.msra.mxu1 %v1480_v48  ;;  %676 = vmatprep.subr.bf16.mxu0 %v1481_v51  ;;  %v57_v48 = vpack.c.bf16 %v50_v47, %v50_v47  ;;  %v1561_v51 = vld [vmem:[#allocation2 + $0x64] ss:$8 sps:$4 sm:$0xff]  }
  0x4c   :  { %717 = vmatprep.subr.bf16.mxu1 %v1483_v53  ;;  %v1564_v53 = vld [vmem:[#allocation2 + $0x54] ss:$8 sps:$4 sm:$0xff]  }
  0x4e   :  { %677 = vmatpush2.bf16.msra.mxu0 %v1485_v54  ;;  %v1562_v54 = vld [vmem:[#allocation2 + $0x50] ss:$8 sps:$4 sm:$0xff]  }
  0x4f   :  { %718 = vmatpush2.bf16.msra.mxu1 %v1486_v55  ;;  %678 = vmatprep.subr.bf16.mxu0 %v1487_v56  ;;  %v1567_v55 = vld [vmem:[#allocation2 + $0x44] ss:$8 sps:$4 sm:$0xff]   ;;  %v1565_v56 = vld [vmem:[#allocation2 + $0x40] ss:$8 sps:$4 sm:$0xff]  }
  0x50   :  { %719 = vmatprep.subr.bf16.mxu1 %v1489_v57  ;;  %v1570_v57 = vld [vmem:[#allocation2 + $0x34] ss:$8 sps:$4 sm:$0xff]  }
  0x52   :  { %679 = vmatpush2.bf16.msra.mxu0 %v1491_v58  ;;  %v1568_v58 = vld [vmem:[#allocation2 + $0x30] ss:$8 sps:$4 sm:$0xff]  }
  0x53   :  { %720 = vmatpush2.bf16.msra.mxu1 %v1492_v59  ;;  %680 = vmatprep.subr.bf16.mxu0 %v1493_v60  ;;  %v1573_v59 = vld [vmem:[#allocation2 + $0x24] ss:$8 sps:$4 sm:$0xff]   ;;  %v1571_v60 = vld [vmem:[#allocation2 + $0x20] ss:$8 sps:$4 sm:$0xff]  }
  0x54   :  { %721 = vmatprep.subr.bf16.mxu1 %v1495_v61  ;;  %v1576_v61 = vld [vmem:[#allocation2 + $0x14] ss:$8 sps:$4 sm:$0xff]  }
  0x56   :  { %681 = vmatpush2.bf16.msra.mxu0 %v1497_v62  ;;  %v1574_v62 = vld [vmem:[#allocation2 + $0x10] ss:$8 sps:$4 sm:$0xff]  }
  0x57   :  { %722 = vmatpush2.bf16.msra.mxu1 %v1498_v63  ;;  %682 = vmatprep.subr.bf16.mxu0 %v1499_v0  ;;  %v1579_v63 = vld [vmem:[#allocation2 + $0x4] ss:$8 sps:$4 sm:$0xff]   ;;  %v1577_v0 = vld [vmem:[#allocation2] ss:$8 sps:$4 sm:$0xff]  }
  0x58   :  { %723 = vmatprep.subr.bf16.mxu1 %v1501_v1  ;;  %v1582_v1 = vld [vmem:[#allocation2 + $0xf4] ss:$8 sps:$4 sm:$0xff]  }
  0x5a   :  { %683 = vmatpush2.bf16.msra.mxu0 %v1503_v2  ;;  %v1580_v2 = vld [vmem:[#allocation2 + $0xf0] ss:$8 sps:$4 sm:$0xff]  }
  0x5b   :  { %724 = vmatpush2.bf16.msra.mxu1 %v1504_v3  ;;  %734 = vmatprep.subr.bf16.mxu0 %v1507_v6  ;;  %v1585_v3 = vld [vmem:[#allocation2 + $0xe4] ss:$8 sps:$4 sm:$0xff]   ;;  %v1586_v6 = vld [vmem:[#allocation2 + $0xd0] ss:$8 sps:$4 sm:$0xff]  }
  0x5c   :  { %789 = vmatprep.subr.bf16.mxu1 %v1552_v12  ;;  %v1595_v12 = vld [vmem:[#allocation2 + $0xa0] ss:$8 sps:$4 sm:$0xff]  }
  0x5d   :  { %685 = vmatmul.mubr.bf16.vlgmr.msra.gmra.mxu0 %v53_v7  ;;  %v1591_v7 = vld [vmem:[#allocation2 + $0xc4] ss:$8 sps:$4 sm:$0xff]  }
  0x5e   :  { %726 = vmatmul.mubr.bf16.vlgmr.msra.gmra.mxu1 %v55_v8  ;;  %735 = vmatpush1.bf16.msra.mxu0 %v1505_v9  ;;  %v1589_v8 = vld [vmem:[#allocation2 + $0xc0] ss:$8 sps:$4 sm:$0xff]   ;;  %v1594_v9 = vld [vmem:[#allocation2 + $0xb4] ss:$8 sps:$4 sm:$0xff]  }
  0x5f   :  { %736 = vmatprep.subr.bf16.mxu0 %v1510_v10  ;;  %790 = vmatpush1.bf16.msra.mxu1 %v1550_v11  ;;  %v1592_v10 = vld [vmem:[#allocation2 + $0xb0] ss:$8 sps:$4 sm:$0xff]   ;;  %v1597_v11 = vld [vmem:[#allocation2 + $0xa4] ss:$8 sps:$4 sm:$0xff]  }
  0x60   :  { %807 = vmatprep.mubr.bf16.mxu1 %v1670_v19  ;;  %766 = vmatprep.mubr.bf16.mxu0 %v58_v17  ;;  %v1604_v17 = vld [vmem:[#allocation4 + $0x78] sm:$0xff]  }
  0x61   :  { %1012 = vmatprep.subr.bf16.mxu1 %v1558_v50 }
  0x62   :  { %737 = vmatpush1.bf16.msra.mxu0 %v1508_v13  ;;  %v1600_v13 = vld [vmem:[#allocation2 + $0x94] ss:$8 sps:$4 sm:$0xff]  }
  0x63   :  { %738 = vmatprep.subr.bf16.mxu0 %v1513_v14  ;;  %v1598_v14 = vld [vmem:[#allocation2 + $0x90] ss:$8 sps:$4 sm:$0xff]  }
  0x66   :  { %1331 = vmatmul.mubr.msk.bf16.vlgmr.msra.gmra.mxu1 %vm648_vm0, %v59_v21  ;;  %739 = vmatpush1.bf16.msra.mxu0 %v1511_v18  ;;  %v1605_v18 = vld [vmem:[#allocation4 + $0x38] sm:$0xff]   ;;  %v1607_v21 = vld [vmem:[#allocation4 + $0x30] sm:$0xff]  }
  0x67   :  { %740 = vmatprep.subr.bf16.mxu0 %v1516_v20  ;;  %1013 = vmatpush1.bf16.msra.mxu1 %v1556_v49  ;;  %v1606_v20 = vld [vmem:[#allocation4 + $0x70] sm:$0xff]  }
  0x68   :  { %1014 = vmatprep.subr.bf16.mxu1 %v1561_v51 }
  0x6a   :  { %741 = vmatpush1.bf16.msra.mxu0 %v1514_v22  ;;  %v1608_v22 = vld [vmem:[#allocation4 + $0x68] sm:$0xff]  }
  0x6b   :  { %742 = vmatprep.subr.bf16.mxu0 %v1519_v23  ;;  %1015 = vmatpush1.bf16.msra.mxu1 %v1559_v52  ;;  %v1609_v23 = vld [vmem:[#allocation4 + $0x28] sm:$0xff]  }
  0x6c   :  { %1016 = vmatprep.subr.bf16.mxu1 %v1564_v53 }
  0x6e   :  { %743 = vmatpush1.bf16.msra.mxu0 %v1517_v24  ;;  %v1610_v24 = vld [vmem:[#allocation4 + $0x60] sm:$0xff]  }
  0x6f   :  { %744 = vmatprep.subr.bf16.mxu0 %v1522_v25  ;;  %1017 = vmatpush1.bf16.msra.mxu1 %v1562_v54  ;;  %v1611_v25 = vld [vmem:[#allocation4 + $0x20] sm:$0xff]  }
  0x70   :  { %1018 = vmatprep.subr.bf16.mxu1 %v1567_v55 }
  0x72   :  { %745 = vmatpush1.bf16.msra.mxu0 %v1520_v26  ;;  %v1612_v26 = vld [vmem:[#allocation4 + $0x58] sm:$0xff]  }
  0x73   :  { %746 = vmatprep.subr.bf16.mxu0 %v1525_v27  ;;  %1019 = vmatpush1.bf16.msra.mxu1 %v1565_v56  ;;  %v1613_v27 = vld [vmem:[#allocation4 + $0x18] sm:$0xff]   ;;  %v1616_v56 = vld [vmem:[#allocation4 + $0x48] sm:$0xff]  }
  0x74   :  { %1020 = vmatprep.subr.bf16.mxu1 %v1570_v57  ;;  %v1617_v57 = vld [vmem:[#allocation4 + $0x8] sm:$0xff]  }
  0x76   :  { %747 = vmatpush1.bf16.msra.mxu0 %v1523_v28  ;;  %v1614_v28 = vld [vmem:[#allocation4 + $0x50] sm:$0xff]  }
  0x77   :  { %748 = vmatprep.subr.bf16.mxu0 %v1528_v29  ;;  %1021 = vmatpush1.bf16.msra.mxu1 %v1568_v58  ;;  %v1615_v29 = vld [vmem:[#allocation4 + $0x10] sm:$0xff]   ;;  %v1618_v58 = vld [vmem:[#allocation4 + $0x40] sm:$0xff]  }
  0x78   :  { %1022 = vmatprep.subr.bf16.mxu1 %v1573_v59  ;;  %v1619_v59 = vld [vmem:[#allocation4] sm:$0xff]  }
  0x7a   :  { %749 = vmatpush1.bf16.msra.mxu0 %v1526_v30 }
  0x7b   :  { %750 = vmatprep.subr.bf16.mxu0 %v1531_v31  ;;  %1023 = vmatpush1.bf16.msra.mxu1 %v1571_v60 }
  0x7c   :  { %1024 = vmatprep.subr.bf16.mxu1 %v1576_v61 }
  0x7e   :  { %751 = vmatpush2.bf16.msra.mxu0 %v1529_v32 }
  0x7f   :  { %752 = vmatprep.subr.bf16.mxu0 %v1534_v33  ;;  %1025 = vmatpush1.bf16.msra.mxu1 %v1574_v62 }
  0x80   :  { %1026 = vmatprep.subr.bf16.mxu1 %v1579_v63 }
  0x82   :  { %753 = vmatpush2.bf16.msra.mxu0 %v1532_v34 }
  0x83   :  { %754 = vmatprep.subr.bf16.mxu0 %v1537_v35  ;;  %1027 = vmatpush1.bf16.msra.mxu1 %v1577_v0 }
  0x84   :  { %1028 = vmatprep.subr.bf16.mxu1 %v1582_v1 }
  0x86   :  { %755 = vmatpush2.bf16.msra.mxu0 %v1535_v36 }
  0x87   :  { %756 = vmatprep.subr.bf16.mxu0 %v1540_v37  ;;  %1029 = vmatpush2.bf16.msra.mxu1 %v1580_v2 }
  0x88   :  { %1030 = vmatprep.subr.bf16.mxu1 %v1585_v3 }
  0x8a   :  { %757 = vmatpush2.bf16.msra.mxu0 %v1538_v38 }
  0x8b   :  { %758 = vmatprep.subr.bf16.mxu0 %v1543_v39  ;;  %1031 = vmatpush2.bf16.msra.mxu1 %v1583_v4 }
  0x8c   :  { %1032 = vmatprep.subr.bf16.mxu1 %v1588_v5 }
  0x8e   :  { %759 = vmatpush2.bf16.msra.mxu0 %v1541_v40 }
  0x8f   :  { %760 = vmatprep.subr.bf16.mxu0 %v1546_v41  ;;  %1033 = vmatpush2.bf16.msra.mxu1 %v1586_v6 }
  0x90   :  { %1034 = vmatprep.subr.bf16.mxu1 %v1591_v7 }
  0x92   :  { %761 = vmatpush2.bf16.msra.mxu0 %v1544_v42 }
  0x93   :  { %762 = vmatprep.subr.bf16.mxu0 %v1549_v43  ;;  %1035 = vmatpush2.bf16.msra.mxu1 %v1589_v8 }
  0x94   :  { %1036 = vmatprep.subr.bf16.mxu1 %v1594_v9 }
  0x96   :  { %763 = vmatpush2.bf16.msra.mxu0 %v1547_v44 }
  0x97   :  { %764 = vmatprep.subr.bf16.mxu0 %v1555_v45  ;;  %1037 = vmatpush2.bf16.msra.mxu1 %v1592_v10 }
  0x98   :  { %1038 = vmatprep.subr.bf16.mxu1 %v1597_v11 }
  0x9a   :  { %765 = vmatpush2.bf16.msra.mxu0 %v1553_v46 }
  0x9b   :  { %1039 = vmatpush2.bf16.msra.mxu1 %v1595_v12  ;;  %1380 = vmatprep.subr.bf16.mxu0 %v1604_v17 }
  0x9c   :  { %1040 = vmatprep.subr.bf16.mxu1 %v1600_v13 }
  0x9d   :  { %767 = vmatmul.mubr.bf16.vlgmr.msra.gmra.mxu0 %v57_v48 }
  0x9e   :  { %1381 = vmatpush3.bf16.msra.mxu0 %v1605_v18 }
  0x9f   :  { %1041 = vmatpush2.bf16.msra.mxu1 %v1598_v14  ;;  %1382 = vmatprep.subr.bf16.mxu0 %v1606_v20 }
  0xa0   :  { %1042 = vmatprep.subr.bf16.mxu1 %v1603_v15 }
  0xa2   :  { %1383 = vmatpush3.bf16.msra.mxu0 %v1607_v21 }
  0xa3   :  { %1043 = vmatpush2.bf16.msra.mxu1 %v1601_v16  ;;  %1384 = vmatprep.subr.bf16.mxu0 %v1608_v22 }
  0xa6   :  { %1385 = vmatpush3.bf16.msra.mxu0 %v1609_v23 }
  0xa7   :  { %1386 = vmatprep.subr.bf16.mxu0 %v1610_v24 }
  0xaa   :  { %1387 = vmatpush3.bf16.msra.mxu0 %v1611_v25 }
  0xab   :  { %1388 = vmatprep.subr.bf16.mxu0 %v1612_v26 }
  0xae   :  { %1389 = vmatpush3.bf16.msra.mxu0 %v1613_v27 }
  0xaf   :  { %1390 = vmatprep.subr.bf16.mxu0 %v1614_v28 }
  0xb2   :  { %1391 = vmatpush3.bf16.msra.mxu0 %v1615_v29 }
  0xb3   :  { %1392 = vmatprep.subr.bf16.mxu0 %v1616_v56 }
  0xb6   :  { %1393 = vmatpush3.bf16.msra.mxu0 %v1617_v57 }
  0xb7   :  { %1394 = vmatprep.subr.bf16.mxu0 %v1618_v58 }
  0xba   :  { %1395 = vmatpush3.bf16.msra.mxu0 %v1619_v59 }
 0x11d   :  { %v686_v30 = vpop.f32.mrf.mxu0 }
 0x11e   :  { %v727_v31 = vpop.f32.mrf.mxu1 }
 0x11f   :  { %v728_v32 = vadd.f32 %v727_v31, %v686_v30  ;;  %v688_v33 = vpop.f32.mrf.mxu0 }
 0x120   :  { %v729_v34 = vpop.f32.mrf.mxu1 }
 0x121   :  { %v690_v35 = vpop.f32.mrf.mxu0  ;;  %v730_v44 = vadd.f32 %v729_v34, %v688_v33 }
 0x122   :  { %v731_v36 = vpop.f32.mrf.mxu1 }
 0x123   :  { %v691_v37 = vpop.f32.mrf.mxu0 }
 0x124   :  { %v732_v38 = vpop.f32.mrf.mxu1 }
 0x126   :  { %v809_v39 = vpop.f32.mrf.mxu1 }
 0x128   :  { %v811_v40 = vpop.f32.mrf.mxu1 }
 0x12a   :  { %v813_v41 = vpop.f32.mrf.mxu1 }
 0x12c   :  { %v814_v42 = vpop.f32.mrf.mxu1 }
 0x15d   :  { %v768_v43 = vpop.f32.mrf.mxu0 }
 0x15e   :  { %v769_v45 = vadd.f32 %v768_v43, %v728_v32 }
 0x15f   :  { %v770_v46 = vpop.f32.mrf.mxu0 }
 0x160   :  { %v810_v47 = vadd.f32 %v809_v39, %v769_v45  ;;  %v771_v48 = vadd.f32 %v770_v46, %v730_v44 }
 0x161   :  { %v772_v49 = vpop.f32.mrf.mxu0 }
 0x162   :  { %v812_v50 = vadd.f32 %v811_v40, %v771_v48  ;;  %v816_v51 = vpack.c.bf16 %v810_v47, %v810_v47 }
 0x163   :  { %v773_v52 = vpop.f32.mrf.mxu0 }
 0x164   :  { %v817_v53 = vpack.c.bf16 %v812_v50, %v812_v50  ;;  %v818_v55 = vmax.bf16 %v1670_v19, %v816_v51 }
 0x166   :  { %v819_v54 = vmax.bf16 %v1670_v19, %v817_v53 }
 0x168   :  { %1044 = vmatprep.mubr.bf16.mxu1 %v819_v54 }
 0x169   :  { %1045 = vmatmul.mubr.bf16.vlgmr.msra.gmra.mxu1 %v818_v55 }
 0x229   :  { %v1046_v60 = vpop.f32.mrf.mxu1 }
 0x22a   :  { %v1053_v61 = vpack.c.bf16 %v1046_v60, %v1046_v60 }
 0x22b   :  { %v1048_v62 = vpop.f32.mrf.mxu1 }
 0x22c   :  { %v1054_v63 = vpack.c.bf16 %v1048_v62, %v1048_v62  ;;  %v1055_v2 = vmax.bf16 %v1670_v19, %v1053_v61 }
 0x22d   :  { %v1050_v0 = vpop.f32.mrf.mxu1 }
 0x22e   :  { %v1056_v1 = vmax.bf16 %v1670_v19, %v1054_v63 }
 0x22f   :  { %v1051_v3 = vpop.f32.mrf.mxu1 }
 0x230   :  { %1217 = vmatprep.mubr.bf16.mxu0 %v1056_v1 }
 0x231   :  { %1218 = vmatmul.mubr.bf16.vlgmr.msra.gmra.mxu0 %v1055_v2 }
 0x2f1   :  { %v1396_v4 = vpop.f32.mrf.mxu0 }
 0x2f3   :  { %v1397_v5 = vpop.f32.mrf.mxu0 }
 0x2f4   :  { %v1398_v6 = vadd.f32 %v1397_v5, %v1396_v4 }
 0x2f5   :  { %v1399_v7 = vpop.f32.mrf.mxu0 }
 0x2f6   :  { %v1225_v8 = vpack.c.bf16 %v1398_v6, %v1398_v6 }
 0x2f7   :  { %v1400_v9 = vpop.f32.mrf.mxu0 }
 0x2f8   :  { %1226 = vst [vmem:[%s2029_s4] sm:$0xf] %v1225_v8 }
 0x2f9   :  { %1231 = vsyncpa [#allocation3], 1 }
 0x2fa   :  { %1232 = vsyncpa [#allocation5], 1 }

</bundles_post_ra>
